<compile_context>
chip_gen: v7x
topology: tpu7x:2x2x1
jax: 0.10.0
libtpu: 0.0.40
codegen_flags: <defaults>
</compile_context>

<pallas_src>
import functools

import jax
import jax.numpy as jnp
from jax.experimental import pallas as pl
from jax.experimental.pallas import tpu as pltpu


def ffn_kernel(x_ref, w1_ref, b1_ref, w2_ref, b2_ref, o_ref, *, compute_dtype):
    # x_ref : (TM, H)   w1_ref: (H, F)  b1_ref: (1, F)  [f32]
    # w2_ref: (F, H)    b2_ref: (1, H)  [f32]           o_ref : (TM, H)
    x = x_ref[...]
    if compute_dtype is not None:
        # Per-tile cast (VPU) hidden under MXU slack; avoids a wrapper-side
        # full-HBM pass over the activations.
        x = x.astype(compute_dtype)

    # First linear (MXU, f32 accumulation) + bias + ReLU in f32.
    h = jnp.dot(x, w1_ref[...], preferred_element_type=jnp.float32)
    h = jnp.maximum(h + b1_ref[...], 0.0)

    # TODO(synk): training-mode dropout (p=DROPOUT_R) omitted; eval-mode identity.

    # Second linear: feed the MXU in the weight dtype, accumulate in f32.
    h = h.astype(w2_ref.dtype)
    out = jnp.dot(h, w2_ref[...], preferred_element_type=jnp.float32)
    out = out + b2_ref[...]

    o_ref[...] = out.astype(o_ref.dtype)


def _round_up(x, m):
    return ((x + m - 1) // m) * m


def _vmem_capacity_bytes():
    try:
        return int(pltpu.get_tpu_info().vmem_capacity_bytes)
    except Exception:
        return 128 * 1024 * 1024  # conservative default (v5e/v6e physical)


def ffn_pallas(x, w1, b1, w2, b2, *, block_m=512, compute_dtype="auto"):
    """x: (B, S, H) -> (B, S, H).

    block_m:       requested row-tile size (rows of B*S per grid step).
    compute_dtype: MXU input dtype. "auto" -> bf16 for real MCAN sizes
                   (H>=128, F>=512), f32 otherwise. Accumulation is always f32.
    """
    B, S, H = x.shape
    F = w1.shape[1]
    out_dtype = x.dtype

    M = B * S
    x2 = x.reshape(M, H)

    if compute_dtype == "auto":
        compute_dtype = jnp.bfloat16 if (H >= 128 and F >= 512) else None

    if compute_dtype is not None:
        # One-time weight casts stay in the wrapper (tiny, amortized);
        # the activation cast happens in-kernel.
        w1 = w1.astype(compute_dtype)
        w2 = w2.astype(compute_dtype)

    # Biases kept in f32 so bias-add / ReLU run in f32 regardless of MXU dtype.
    b1_2 = b1.reshape(1, F).astype(jnp.float32)
    b2_2 = b2.reshape(1, H).astype(jnp.float32)

    # --- M tiling (no padding copy; ragged last block clipped by Pallas) ----
    align = 256 if M >= 512 else 8  # MXU-edge alignment when M is big enough
    if compute_dtype is not None and jnp.dtype(compute_dtype).itemsize == 2:
        align = max(align, 16)      # bf16 sublane packing
    tm = max(align, min(_round_up(block_m, align), _round_up(M, align)))
    grid_m = pl.cdiv(M, tm)
    if grid_m < 2 and M > align:
        # Keep >=2 grid steps so both v7x TensorCores get work (neutral on
        # single-TC chips).
        tm = _round_up(pl.cdiv(M, 2), align)
        grid_m = pl.cdiv(M, tm)

    # --- VMEM budget ---------------------------------------------------------
    in_isz = jnp.dtype(x2.dtype).itemsize
    w_isz = jnp.dtype(w1.dtype).itemsize
    out_isz = jnp.dtype(out_dtype).itemsize
    cmp_isz = (jnp.dtype(compute_dtype).itemsize
               if compute_dtype is not None else in_isz)
    needed = (
        2 * tm * H * in_isz            # double-buffered input tiles
        + 2 * tm * H * out_isz         # double-buffered output tiles
        + 2 * (H * F + F * H) * w_isz  # resident weights (conservative: 2 bufs)
        + 2 * (F + H) * 4              # biases (f32)
        + tm * H * cmp_isz             # in-kernel x cast
        + tm * F * 4                   # f32 hidden activations
        + tm * F * cmp_isz             # hidden cast feeding 2nd matmul
        + tm * H * 4                   # f32 out tile before final cast
    )
    # 20% headroom for compiler scratch; capacity is per-TensorCore on v7x.
    cap = int(0.8 * _vmem_capacity_bytes())
    vmem_limit = int(min(max(int(1.5 * needed), 32 * 1024 * 1024), cap))

    # Advisory cost estimate for XLA scheduling around this custom call.
    cost = pl.CostEstimate(
        flops=4 * M * H * F,
        transcendentals=0,
        bytes_accessed=(M * H * (in_isz + out_isz)
                        + 2 * H * F * w_isz + (F + H) * 4),
    )

    kernel = functools.partial(ffn_kernel, compute_dtype=compute_dtype)

    def call(single_buffer_weights):
        w_kwargs = (dict(pipeline_mode=pl.Buffered(1))
                    if single_buffer_weights else {})
        return pl.pallas_call(
            kernel,
            out_shape=jax.ShapeDtypeStruct((M, H), out_dtype),
            grid=(grid_m,),
            in_specs=[
                pl.BlockSpec((tm, H), lambda i: (i, 0)),              # x tile
                pl.BlockSpec((H, F), lambda i: (0, 0), **w_kwargs),   # w1 resident
                pl.BlockSpec((1, F), lambda i: (0, 0), **w_kwargs),   # b1 resident
                pl.BlockSpec((F, H), lambda i: (0, 0), **w_kwargs),   # w2 resident
                pl.BlockSpec((1, H), lambda i: (0, 0), **w_kwargs),   # b2 resident
            ],
            out_specs=pl.BlockSpec((tm, H), lambda i: (i, 0)),
            compiler_params=pltpu.CompilerParams(
                dimension_semantics=("parallel",),
                vmem_limit_bytes=vmem_limit,
            ),
            cost_estimate=cost,
        )(x2, w1, b1_2, w2, b2_2)

    try:
        out2 = call(single_buffer_weights=True)
    except Exception:
        # Fallback if single-buffered pipeline_mode is rejected by this
        # jax/Mosaic version: default double-buffered weights.
        out2 = call(single_buffer_weights=False)

    return out2.reshape(B, S, H)


def ffn_reference(x, w1, b1, w2, b2):
    h = jnp.maximum(jnp.dot(x, w1) + b1, 0.0)
    return jnp.dot(h, w2) + b2


if __name__ == "__main__":
    # Small config consistent with the module: HIDDEN_SIZE=32, FF_SIZE=128,
    # batch=2, seq=8.  (Real MCAN uses HIDDEN_SIZE=512, FF_SIZE=2048.)
    B, S, H, F = 2, 8, 32, 128

    key = jax.random.PRNGKey(0)
    kx, kw1, kb1, kw2, kb2 = jax.random.split(key, 5)

    x = jax.random.normal(kx, (B, S, H), dtype=jnp.float32)

    # Deterministic parameter init (kaiming-uniform-ish scaling).
    w1 = jax.random.uniform(kw1, (H, F), dtype=jnp.float32,
                            minval=-1.0, maxval=1.0) / jnp.sqrt(H)
    b1 = jax.random.uniform(kb1, (F,), dtype=jnp.float32,
                            minval=-1.0, maxval=1.0) / jnp.sqrt(H)
    w2 = jax.random.uniform(kw2, (F, H), dtype=jnp.float32,
                            minval=-1.0, maxval=1.0) / jnp.sqrt(F)
    b2 = jax.random.uniform(kb2, (H,), dtype=jnp.float32,
                            minval=-1.0, maxval=1.0) / jnp.sqrt(F)

    ref = ffn_reference(x, w1, b1, w2, b2)

    # f32 MXU path (small block_m -> tiled/pipelined path with grid_m=2 even
    # at this toy size; also what "auto" picks for H=32).
    out = jax.block_until_ready(ffn_pallas(x, w1, b1, w2, b2, block_m=8))
    assert out.shape == (B, S, H)
    assert jnp.allclose(out, ref, atol=1e-5, rtol=1e-5), "f32 mismatch vs reference"

    # bf16 MXU path (default for real MCAN sizes): looser tolerance.
    out_bf16 = jax.block_until_ready(
        ffn_pallas(x, w1, b1, w2, b2, block_m=8, compute_dtype=jnp.bfloat16))
    assert out_bf16.shape == (B, S, H)
    assert jnp.allclose(out_bf16, ref, atol=5e-2, rtol=5e-2), "bf16 mismatch vs reference"

    print("KERNEL_OK")
</pallas_src>

<mosaic_0001>
module attributes {stable_mosaic.version = 11 : i64} {
  func.func @ffn_kernel(%arg0: i32, %arg1: memref<8x32xf32, #tpu.memory_space<vmem>>, %arg2: memref<32x128xf32, #tpu.memory_space<vmem>>, %arg3: memref<1x128xf32, #tpu.memory_space<vmem>>, %arg4: memref<128x32xf32, #tpu.memory_space<vmem>>, %arg5: memref<1x32xf32, #tpu.memory_space<vmem>>, %arg6: memref<8x32xf32, #tpu.memory_space<vmem>>) attributes {dimension_semantics = [#tpu.dimension_semantics<parallel>], iteration_bounds = array<i64: 2>, scalar_prefetch = 0 : i64, scratch_operands = 0 : i64, tpu.core_type = #tpu.core_type<tc>, window_params = [{transform_indices = @transform_0, window_bounds = array<i64: 8, 32>}, {pipeline_mode = #tpu.pipeline_mode<synchronous>, transform_indices = @transform_1, window_bounds = array<i64: 32, 128>}, {pipeline_mode = #tpu.pipeline_mode<synchronous>, transform_indices = @transform_2, window_bounds = array<i64: 1, 128>}, {pipeline_mode = #tpu.pipeline_mode<synchronous>, transform_indices = @transform_3, window_bounds = array<i64: 128, 32>}, {pipeline_mode = #tpu.pipeline_mode<synchronous>, transform_indices = @transform_4, window_bounds = array<i64: 1, 32>}, {transform_indices = @transform_5, window_bounds = array<i64: 8, 32>}]} {
    %c0 = arith.constant 0 : index
    %c0_0 = arith.constant 0 : index
    %0 = vector.load %arg1[%c0, %c0_0] : memref<8x32xf32, #tpu.memory_space<vmem>>, vector<8x32xf32>
    %c0_1 = arith.constant 0 : index
    %c0_2 = arith.constant 0 : index
    %1 = vector.load %arg2[%c0_1, %c0_2] : memref<32x128xf32, #tpu.memory_space<vmem>>, vector<32x128xf32>
    %cst = arith.constant dense<0.000000e+00> : vector<8x128xf32>
    %2 = tpu.matmul %0, %1, %cst {dimension_numbers = #tpu.dot_dimension_numbers<[1], [0], [0], [1], [0, 0, 1, 1], [], []>} : vector<8x32xf32>, vector<32x128xf32>, vector<8x128xf32> -> vector<8x128xf32>
    %c0_3 = arith.constant 0 : index
    %c0_4 = arith.constant 0 : index
    %3 = vector.load %arg3[%c0_3, %c0_4] : memref<1x128xf32, #tpu.memory_space<vmem>>, vector<1x128xf32>
    %4 = vector.broadcast %3 : vector<1x128xf32> to vector<8x128xf32>
    %5 = arith.addf %2, %4 : vector<8x128xf32>
    %cst_5 = arith.constant 0.000000e+00 : f32
    %6 = vector.broadcast %cst_5 : f32 to vector<8x128xf32>
    %7 = arith.maximumf %5, %6 : vector<8x128xf32>
    %c0_6 = arith.constant 0 : index
    %c0_7 = arith.constant 0 : index
    %8 = vector.load %arg4[%c0_6, %c0_7] : memref<128x32xf32, #tpu.memory_space<vmem>>, vector<128x32xf32>
    %cst_8 = arith.constant dense<0.000000e+00> : vector<8x32xf32>
    %9 = tpu.matmul %7, %8, %cst_8 {dimension_numbers = #tpu.dot_dimension_numbers<[1], [0], [0], [1], [0, 0, 1, 1], [], []>} : vector<8x128xf32>, vector<128x32xf32>, vector<8x32xf32> -> vector<8x32xf32>
    %c0_9 = arith.constant 0 : index
    %c0_10 = arith.constant 0 : index
    %10 = vector.load %arg5[%c0_9, %c0_10] : memref<1x32xf32, #tpu.memory_space<vmem>>, vector<1x32xf32>
    %11 = vector.broadcast %10 : vector<1x32xf32> to vector<8x32xf32>
    %12 = arith.addf %9, %11 : vector<8x32xf32>
    %c0_11 = arith.constant 0 : index
    %c0_12 = arith.constant 0 : index
    %13 = vector.load %arg6[%c0_11, %c0_12] : memref<8x32xf32, #tpu.memory_space<vmem>>, vector<8x32xf32>
    tpu.vector_store %arg6[%c0_11, %c0_12], %12 {strides = array<i32>} : memref<8x32xf32, #tpu.memory_space<vmem>>, vector<8x32xf32>,
    return
  }
  func.func @transform_0(%arg0: i32) -> (i32, i32) {
    %c0_i32 = arith.constant 0 : i32
    %c0_i32_0 = arith.constant 0 : i32
    return %arg0, %c0_i32 : i32, i32
  }
  func.func @transform_1(%arg0: i32) -> (i32, i32) {
    %c0_i32 = arith.constant 0 : i32
    %c0_i32_0 = arith.constant 0 : i32
    %c0_i32_1 = arith.constant 0 : i32
    return %c0_i32, %c0_i32_0 : i32, i32
  }
  func.func @transform_2(%arg0: i32) -> (i32, i32) {
    %c0_i32 = arith.constant 0 : i32
    %c0_i32_0 = arith.constant 0 : i32
    %c0_i32_1 = arith.constant 0 : i32
    return %c0_i32, %c0_i32_0 : i32, i32
  }
  func.func @transform_3(%arg0: i32) -> (i32, i32) {
    %c0_i32 = arith.constant 0 : i32
    %c0_i32_0 = arith.constant 0 : i32
    %c0_i32_1 = arith.constant 0 : i32
    return %c0_i32, %c0_i32_0 : i32, i32
  }
  func.func @transform_4(%arg0: i32) -> (i32, i32) {
    %c0_i32 = arith.constant 0 : i32
    %c0_i32_0 = arith.constant 0 : i32
    %c0_i32_1 = arith.constant 0 : i32
    return %c0_i32, %c0_i32_0 : i32, i32
  }
  func.func @transform_5(%arg0: i32) -> (i32, i32) {
    %c0_i32 = arith.constant 0 : i32
    %c0_i32_0 = arith.constant 0 : i32
    return %arg0, %c0_i32 : i32, i32
  }
}

module attributes {stable_mosaic.version = 11 : i64} {
  func.func @ffn_kernel(%arg0: i32, %arg1: memref<8x32xf32, #tpu.memory_space<vmem>>, %arg2: memref<32x128xf32, #tpu.memory_space<vmem>>, %arg3: memref<1x128xf32, #tpu.memory_space<vmem>>, %arg4: memref<128x32xf32, #tpu.memory_space<vmem>>, %arg5: memref<1x32xf32, #tpu.memory_space<vmem>>, %arg6: memref<8x32xf32, #tpu.memory_space<vmem>>) attributes {dimension_semantics = [#tpu.dimension_semantics<parallel>], iteration_bounds = array<i64: 2>, scalar_prefetch = 0 : i64, scratch_operands = 0 : i64, tpu.core_type = #tpu.core_type<tc>, window_params = [{transform_indices = @transform_0, window_bounds = array<i64: 8, 32>}, {pipeline_mode = #tpu.pipeline_mode<synchronous>, transform_indices = @transform_1, window_bounds = array<i64: 32, 128>}, {pipeline_mode = #tpu.pipeline_mode<synchronous>, transform_indices = @transform_2, window_bounds = array<i64: 1, 128>}, {pipeline_mode = #tpu.pipeline_mode<synchronous>, transform_indices = @transform_3, window_bounds = array<i64: 128, 32>}, {pipeline_mode = #tpu.pipeline_mode<synchronous>, transform_indices = @transform_4, window_bounds = array<i64: 1, 32>}, {transform_indices = @transform_5, window_bounds = array<i64: 8, 32>}]} {
    %c0 = arith.constant 0 : index
    %c0_0 = arith.constant 0 : index
    %0 = vector.load %arg1[%c0, %c0_0] : memref<8x32xf32, #tpu.memory_space<vmem>>, vector<8x32xf32>
    %c0_1 = arith.constant 0 : index
    %c0_2 = arith.constant 0 : index
    %1 = vector.load %arg2[%c0_1, %c0_2] : memref<32x128xf32, #tpu.memory_space<vmem>>, vector<32x128xf32>
    %cst = arith.constant dense<0.000000e+00> : vector<8x128xf32>
    %2 = tpu.matmul %0, %1, %cst {dimension_numbers = #tpu.dot_dimension_numbers<[1], [0], [0], [1], [0, 0, 1, 1], [], []>} : vector<8x32xf32>, vector<32x128xf32>, vector<8x128xf32> -> vector<8x128xf32>
    %c0_3 = arith.constant 0 : index
    %c0_4 = arith.constant 0 : index
    %3 = vector.load %arg3[%c0_3, %c0_4] : memref<1x128xf32, #tpu.memory_space<vmem>>, vector<1x128xf32>
    %4 = vector.broadcast %3 : vector<1x128xf32> to vector<8x128xf32>
    %5 = arith.addf %2, %4 : vector<8x128xf32>
    %cst_5 = arith.constant 0.000000e+00 : f32
    %6 = vector.broadcast %cst_5 : f32 to vector<8x128xf32>
    %7 = arith.maximumf %5, %6 : vector<8x128xf32>
    %c0_6 = arith.constant 0 : index
    %c0_7 = arith.constant 0 : index
    %8 = vector.load %arg4[%c0_6, %c0_7] : memref<128x32xf32, #tpu.memory_space<vmem>>, vector<128x32xf32>
    %cst_8 = arith.constant dense<0.000000e+00> : vector<8x32xf32>
    %9 = tpu.matmul %7, %8, %cst_8 {dimension_numbers = #tpu.dot_dimension_numbers<[1], [0], [0], [1], [0, 0, 1, 1], [], []>} : vector<8x128xf32>, vector<128x32xf32>, vector<8x32xf32> -> vector<8x32xf32>
    %c0_9 = arith.constant 0 : index
    %c0_10 = arith.constant 0 : index
    %10 = vector.load %arg5[%c0_9, %c0_10] : memref<1x32xf32, #tpu.memory_space<vmem>>, vector<1x32xf32>
    %11 = vector.broadcast %10 : vector<1x32xf32> to vector<8x32xf32>
    %12 = arith.addf %9, %11 : vector<8x32xf32>
    %c0_11 = arith.constant 0 : index
    %c0_12 = arith.constant 0 : index
    %13 = vector.load %arg6[%c0_11, %c0_12] : memref<8x32xf32, #tpu.memory_space<vmem>>, vector<8x32xf32>
    tpu.vector_store %arg6[%c0_11, %c0_12], %12 {strides = array<i32>} : memref<8x32xf32, #tpu.memory_space<vmem>>, vector<8x32xf32>,
    return
  }
  func.func @transform_0(%arg0: i32) -> (i32, i32) {
    %c0_i32 = arith.constant 0 : i32
    %c0_i32_0 = arith.constant 0 : i32
    return %arg0, %c0_i32 : i32, i32
  }
  func.func @transform_1(%arg0: i32) -> (i32, i32) {
    %c0_i32 = arith.constant 0 : i32
    %c0_i32_0 = arith.constant 0 : i32
    %c0_i32_1 = arith.constant 0 : i32
    return %c0_i32, %c0_i32_0 : i32, i32
  }
  func.func @transform_2(%arg0: i32) -> (i32, i32) {
    %c0_i32 = arith.constant 0 : i32
    %c0_i32_0 = arith.constant 0 : i32
    %c0_i32_1 = arith.constant 0 : i32
    return %c0_i32, %c0_i32_0 : i32, i32
  }
  func.func @transform_3(%arg0: i32) -> (i32, i32) {
    %c0_i32 = arith.constant 0 : i32
    %c0_i32_0 = arith.constant 0 : i32
    %c0_i32_1 = arith.constant 0 : i32
    return %c0_i32, %c0_i32_0 : i32, i32
  }
  func.func @transform_4(%arg0: i32) -> (i32, i32) {
    %c0_i32 = arith.constant 0 : i32
    %c0_i32_0 = arith.constant 0 : i32
    %c0_i32_1 = arith.constant 0 : i32
    return %c0_i32, %c0_i32_0 : i32, i32
  }
  func.func @transform_5(%arg0: i32) -> (i32, i32) {
    %c0_i32 = arith.constant 0 : i32
    %c0_i32_0 = arith.constant 0 : i32
    return %arg0, %c0_i32 : i32, i32
  }
}

</mosaic_0001>

<bundles_post_ra>
// kernel: tpu_custom_call.1
= control target key start
LH: loop header
LB: loop body
LE: loop exit
PB: predicated region body
PF: predicated region fallthrough
CT: control target
= control target key end

     0   :  { %10 = vsyncpa [#allocation3], 0  ;;  %s893_s0 = inlined_call_operand.vmem [shape: f32[16,32], index: 0, kind: input, shape index: {}]   ;;  %s894_s1 = inlined_call_operand.vmem [shape: f32[32,128], index: 1, kind: input, shape index: {}]   ;;  %s895_s2 = inlined_call_operand.vmem [shape: f32[1,128], index: 2, kind: input, shape index: {}]   ;;  %s896_s3 = inlined_call_operand.vmem [shape: f32[128,32], index: 3, kind: input, shape index: {}]   ;;  %s897_s4 = inlined_call_operand.vmem [shape: f32[1,32], index: 4, kind: input, shape index: {}]   ;;  %s898_s5 = inlined_call_operand.hbm [shape: f32[16,32], index: 5, kind: output, shape index: {}]  }
   0x1   :  { %12 = vsyncpa [#allocation3 + $0x1], 0  ;;  %s725_s18 = smov 0   ;;  %s727_s19 = smov 0  }
   0x2   :  { %s729_s20 = smov 0   ;;  %s731_s21 = smov 0  }
   0x3 LB: > { %s746_s22 = sadd.s32 4294967295, %s689_s21   ;;  %s474_s23 = sadd.s32 4294967294, %s689_s21   ;;  %s689_s21 = sphi %s731_s21, %s904_s21   ;;  %s685_s20 = sphi %s729_s20, %s903_s20   ;;  %s681_s19 = sphi %s727_s19, %s902_s19   ;;  %s677_s18 = sphi %s725_s18, %s901_s18  }
   0x4   : > { %s750_s24 = sadd.s32 1, %s689_s21   ;;  %s135_s25 = sadd.s32 1, %s685_s20 }
   0x5   : > { %s132_s26 = ssub.s32 %s689_s21, %s750_s24  ;;  %p145_p0 = scmp.ne.s32.totalorder %s685_s20, %s681_s19 }
   0x6   : > { %p133_p1 = scmp.eq.s32.totalorder %s132_s26, 0  ;;  %p146_p2 = scmp.eq.s32.totalorder %s746_s22, 1 }
   0x7   : > { %p151_p3 = scmp.ne.s32.totalorder %s681_s19, %s677_s18  ;;  %p152_p4 = scmp.eq.s32.totalorder %s474_s23, 1 }
   0x8   : > { %s761_s27 = scalar_select %p133_p1, %s685_s20, %s135_s25  }
   0x9   : > { %p763_p5 = por %p146_p2, %p145_p0  ;;  %p767_p6 = por %p152_p4, %p151_p3 }
   0xa   : > { %p477_p7 = scmp.ge.s32.totalorder %s689_s21, 1  ;;  %p189_p8 = scmp.lt.s32.totalorder %s689_s21, 3 }
   0xc   : > { %p190_p9 = pnand %p477_p7, %p189_p8 }
   0xd   : > { %v221_v0 = vld [vmem:[%s894_s1] sm:$0xff] (!%p190_p9)  ;;  %v222_v1 = vld [vmem:[%s894_s1 + $0x8] sm:$0xff] (!%p190_p9)  ;;  %v223_v2 = vld [vmem:[%s894_s1 + $0x10] sm:$0xff] (!%p190_p9)  ;;  %v691_v3 = vmov (!%p190_p9), 0.0|0.0   ;;  %vm692_vm0 = vmmov (!%p190_p9), 0   ;;  %v693_v6 = vmov (!%p190_p9), 0.0  }
   0xe   : > { %193 = sbr.rel (%p190_p9) target bundleno = 470 (0x1d6), region = 40  ;;  %555 = vmatprep.subr.bf16.mxu0 (!%p190_p9), %v691_v3  ;;  %v556_v4 = vpack.c.bf16 (!%p190_p9), %v222_v1, %v221_v0  ;;  %v224_v5 = vld [vmem:[%s894_s1 + $0x18] sm:$0xff] (!%p190_p9)  ;;  %517 = vmatprep.mubr.msk.f32.mxu0 (!%p190_p9), %vm692_vm0, %v693_v6  ;;  %p216_p10 = scmp.lt.s32.totalorder (!%p190_p9), %s746_s22, 1  ;;  %v307_v7 = vld [vmem:[%s896_s3] sm:$0xff] (!%p190_p9)  ;;  %v308_v8 = vld [vmem:[%s896_s3 + $0x8] sm:$0xff] (!%p190_p9)  ;;  %vm232_vm1 = vcmask (!%p190_p9), 261120  }
   0xf   : > { %561 = vmatprep.subr.bf16.mxu1 (!%p190_p9), %v691_v3  ;;  %v562_v9 = vpack.c.bf16 (!%p190_p9), %v308_v8, %v307_v7  ;;  %v309_v10 = vld [vmem:[%s896_s3 + $0x10] sm:$0xff] (!%p190_p9)  ;;  %v310_v11 = vld [vmem:[%s896_s3 + $0x18] sm:$0xff] (!%p190_p9)  ;;  %552 = vmatprep.mubr.msk.f32.mxu1 (!%p190_p9), %vm692_vm0, %v693_v6  ;;  %v559_v12 = vpack.c.bf16 (!%p190_p9), %v224_v5, %v223_v2  ;;  %v311_v14 = vld [vmem:[%s896_s3 + $0x20] sm:$0xff] (!%p190_p9)  ;;  %s213_s26 = sand.u32 (!%p190_p9), 1, %s681_s19   ;;  %s484_s8 = sshll.u32 (!%p190_p9), %s746_s22, 7 }
  0x10   : > { %557 = vmatpush3.bf16.msra.mxu0 (!%p190_p9), %v556_v4  ;;  %v565_v13 = vpack.c.bf16 (!%p190_p9), %v310_v11, %v309_v10  ;;  %v312_v15 = vld [vmem:[%s896_s3 + $0x28] sm:$0xff] (!%p190_p9)  ;;  %v313_v18 = vld [vmem:[%s896_s3 + $0x30] sm:$0xff] (!%p190_p9)  ;;  %v314_v19 = vld [vmem:[%s896_s3 + $0x38] sm:$0xff] (!%p190_p9)  ;;  %s402_s14 = scalar_lea.sflag (!%p190_p9), [#allocation3], %s213_s26 }
  0x11   : > { %558 = vmatprep.subr.bf16.mxu0 (!%p190_p9), %v691_v3  ;;  %563 = vmatpush3.bf16.msra.mxu1 (!%p190_p9), %v562_v9  ;;  %v568_v17 = vpack.c.bf16 (!%p190_p9), %v312_v15, %v311_v14  ;;  %v571_v20 = vpack.c.bf16 (!%p190_p9), %v314_v19, %v313_v18  ;;  %v315_v21 = vld [vmem:[%s896_s3 + $0x40] sm:$0xff] (!%p190_p9)  ;;  %v316_v22 = vld [vmem:[%s896_s3 + $0x48] sm:$0xff] (!%p190_p9)  ;;  %v317_v24 = vld [vmem:[%s896_s3 + $0x50] sm:$0xff] (!%p190_p9) }
  0x12   : > { %564 = vmatprep.subr.bf16.mxu1 (!%p190_p9), %v691_v3  ;;  %v574_v23 = vpack.c.bf16 (!%p190_p9), %v316_v22, %v315_v21  ;;  %v318_v25 = vld [vmem:[%s896_s3 + $0x58] sm:$0xff] (!%p190_p9)  ;;  %v319_v27 = vld [vmem:[%s896_s3 + $0x60] sm:$0xff] (!%p190_p9)  ;;  %v320_v28 = vld [vmem:[%s896_s3 + $0x68] sm:$0xff] (!%p190_p9) }
  0x13   : > { %v577_v26 = vpack.c.bf16 (!%p190_p9), %v318_v25, %v317_v24  ;;  %v580_v29 = vpack.c.bf16 (!%p190_p9), %v320_v28, %v319_v27  ;;  %v321_v30 = vld [vmem:[%s896_s3 + $0x70] sm:$0xff] (!%p190_p9)  ;;  %v322_v31 = vld [vmem:[%s896_s3 + $0x78] sm:$0xff] (!%p190_p9)  ;;  %v480_v33 = vld [vmem:[%s895_s2] ss:$0 sm:$0xff] (!%p190_p9) }
  0x14   : > { %560 = vmatpush3.bf16.msra.mxu0 (!%p190_p9), %v559_v12  ;;  %v583_v32 = vpack.c.bf16 (!%p190_p9), %v322_v31, %v321_v30  ;;  %v482_v38 = vld [vmem:[%s897_s4] ss:$0 sm:$0xff] (!%p190_p9) }
  0x15   : > { %s217_s30 = scalar_select %p216_p10, %s746_s22, 1  ;;  %566 = vmatpush3.bf16.msra.mxu1 %v565_v13 }
  0x16   : > { %567 = vmatprep.subr.bf16.mxu1 %v691_v3  ;;  %s694_s22 = smov [#allocation2]  }
  0x17   : > { %s479_s6 = sshll.u32 %s217_s30, 3  ;;  %s478_s30 = sshll.u32 %s213_s26, 3 }
  0x18   : > { %s219_s13 = scalar_lea.vmem %s893_s0, %s479_s6  ;;  %s215_s9 = scalar_lea.vmem [#allocation2], %s478_s30 }
  0x19   : > { %v220_v16 = vld [vmem:[%s219_s13] sm:$0xff]  ;;  %569 = vmatpush3.bf16.msra.mxu1 %v568_v17  ;;  %s415_s10 = sshll.u32 %s215_s9, 4  ;;  %s850_s13 = scalar_lea.hbm %s898_s5, %s484_s8  ;;  %s852_s10 = int_to_ptr.vmem [resolvable:$true] %s415_s10 }
  0x1a   : > { %518 = vmatmul.mubr.msk.f32.vlgmr.msra.gmra.mrb[0].mxu0 %vm232_vm1, %v220_v16  ;;  %570 = vmatprep.subr.bf16.mxu1 %v691_v3  ;;  %s627_s15 = scalar_lea.vmem %s852_s10, 128  ;;  %s631_s16 = sshll.u32 %s694_s22, 4  ;;  %s632_s16 = int_to_ptr.vmem [resolvable:$false] %s631_s16 }
  0x1b   : > { %p628_p11 = scmp.ne.s32.totalorder %s852_s10, %s627_s15  ;;  %s633_s17 = scalar_lea.vmem %s632_s16, 256 }
  0x1c   : > { %p634_p0 = scmp.lt.s32.totalorder %s852_s10, %s632_s16  ;;  %p635_p1 = scmp.lt.s32.totalorder %s633_s17, %s627_s15 }
  0x1d   : > { %572 = vmatpush3.bf16.msra.mxu1 %v571_v20  ;;  %p629_p12 = pnand %p628_p11, %p763_p5 }
  0x1e   : > { %573 = vmatprep.subr.bf16.mxu1 %v691_v3  ;;  %p636_p2 = por %p635_p1, %p634_p0 }
  0x1f   : > { %p630_p13 = pneg %p629_p12 }
  0x21   : > { %575 = vmatpush3.bf16.msra.mxu1 %v574_v23  ;;  %p637_p3 = pnand %p636_p2, %p630_p13 }
  0x22   : > { %576 = vmatprep.subr.bf16.mxu1 %v691_v3 }
  0x25   : > { %578 = vmatpush3.bf16.msra.mxu1 %v577_v26 }
  0x26   : > { %579 = vmatprep.subr.bf16.mxu1 %v691_v3 }
  0x29   : > { %581 = vmatpush3.bf16.msra.mxu1 %v580_v29 }
  0x2a   : > { %582 = vmatprep.subr.bf16.mxu1 %v691_v3 }
  0x2d   : > { %584 = vmatpush3.bf16.msra.mxu1 %v583_v32 }
  0xed   : > { %v302_v34 = vpop.f32.mrb[0].mxu0 }
  0xee   : > { %v303_v35 = vadd.f32 %v480_v33, %v302_v34  ;;  %v519_v36 = vpop.f32.mrb[1].mxu0 }
  0xf0   : > { %v306_v37 = vmax.f32 %v303_v35, 0.0 }
  0xf2   : > { %553 = vmatmul.mubr.f32.vlgmr.msra.gmra.mrb[0].mxu1 %v306_v37 }
 0x1c5   : > { %v396_v39 = vpop.f32.mrb[0].mxu1 }
 0x1c6   : > { %v397_v40 = vadd.f32 %v482_v38, %v396_v39  ;;  %v554_v41 = vpop.f32.mrb[1].mxu1 }
 0x1c8   : > { %400 = vst.msk [vmem:[%s215_s9] sm:$0xff] %vm232_vm1, %v397_v40 }
 0x1c9   : > { %640 = shalt.err (!%p637_p3)
}
 0x1ca   : > { %s641_s23 = scalar_lea.hbm %s850_s13, 128  ;;  %s645_s30 = scalar_lea.hbm %s898_s5, 256 }
 0x1cb   : > { %p642_p4 = scmp.ne.s32.totalorder %s850_s13, %s641_s23  ;;  %p646_p9 = scmp.lt.u32.totalorder %s850_s13, %s898_s5 }
 0x1cc   : > { %p647_p10 = scmp.lt.u32.totalorder %s645_s30, %s641_s23  ;;  %p649_p12 = scmp.lt.u32.totalorder %s641_s23, %s850_s13 }
 0x1cd   : > { %p643_p7 = pnand %p642_p4, %p763_p5 }
 0x1ce   : > { %p648_p11 = por %p647_p10, %p646_p9 }
 0x1cf   : > { %p644_p8 = pneg %p643_p7 }
 0x1d0   : > { %p650_p13 = por %p649_p12, %p648_p11 }
 0x1d2   : > { %p651_p0 = pnand %p650_p13, %p644_p8 }
 0x1d4   : > { %654 = shalt.err (!%p651_p0)
}
 0x1d5   : > { %585 = dma.vmem_to_hbm [thread:$0]  (%p763_p5), %s852_s10, 128, %s850_s13, %s402_s14  }
 0x1d6 PF: > { %p591_p1 = scmp.ge.s32.totalorder %s689_s21, 2  ;;  %s427_s8 = sand.u32 1, %s677_s18  }
 0x1d7   : > { %s428_s9 = scalar_lea.sflag [#allocation3], %s427_s8 }
 0x1d8   : > { %p588_p2 = pnand %p591_p1, %p767_p6 }
 0x1da   : > { %672 = dma.done.wait (!%p588_p2), %s428_s9, 128  }
 0x1db   : > { %674 = vsyncadd (!%p588_p2), %s428_s9, 4294967168  ;;  %p15_p3 = scmp.ge.s32.totalorder %s750_s24, 4   ;;  %s901_s18 = smov %s681_s19 }
 0x1dc   : > { %s902_s19 = smov %s685_s20  ;;  %s903_s20 = smov %s761_s27 }
 0x1dd   : > { %s904_s21 = smov %s750_s24  ;;  %17 = sbr.rel (!%p15_p3) target bundleno = 3 (0x3), region = 75 }
 0x1e4   :  { %433 = vsyncpa [#allocation3], 1 }
 0x1e5   :  { %435 = vsyncpa [#allocation3 + $0x1], 1 }

// kernel: tpu_custom_call.1
= control target key start
LH: loop header
LB: loop body
LE: loop exit
PB: predicated region body
PF: predicated region fallthrough
CT: control target
= control target key end

     0   :  { %10 = vsyncpa [#allocation3], 0  ;;  %s893_s0 = inlined_call_operand.vmem [shape: f32[16,32], index: 0, kind: input, shape index: {}]   ;;  %s894_s1 = inlined_call_operand.vmem [shape: f32[32,128], index: 1, kind: input, shape index: {}]   ;;  %s895_s2 = inlined_call_operand.vmem [shape: f32[1,128], index: 2, kind: input, shape index: {}]   ;;  %s896_s3 = inlined_call_operand.vmem [shape: f32[128,32], index: 3, kind: input, shape index: {}]   ;;  %s897_s4 = inlined_call_operand.vmem [shape: f32[1,32], index: 4, kind: input, shape index: {}]   ;;  %s898_s5 = inlined_call_operand.hbm [shape: f32[16,32], index: 5, kind: output, shape index: {}]  }
   0x1   :  { %12 = vsyncpa [#allocation3 + $0x1], 0  ;;  %s725_s18 = smov 0   ;;  %s727_s19 = smov 0  }
   0x2   :  { %s729_s20 = smov 0   ;;  %s731_s21 = smov 0  }
   0x3 LB: > { %s746_s22 = sadd.s32 4294967295, %s689_s21   ;;  %s474_s23 = sadd.s32 4294967294, %s689_s21   ;;  %s689_s21 = sphi %s731_s21, %s904_s21   ;;  %s685_s20 = sphi %s729_s20, %s903_s20   ;;  %s681_s19 = sphi %s727_s19, %s902_s19   ;;  %s677_s18 = sphi %s725_s18, %s901_s18  }
   0x4   : > { %s750_s24 = sadd.s32 1, %s689_s21   ;;  %s135_s25 = sadd.s32 1, %s685_s20 }
   0x5   : > { %s132_s26 = ssub.s32 %s689_s21, %s750_s24  ;;  %p145_p0 = scmp.ne.s32.totalorder %s685_s20, %s681_s19 }
   0x6   : > { %p133_p1 = scmp.eq.s32.totalorder %s132_s26, 0  ;;  %p146_p2 = scmp.eq.s32.totalorder %s746_s22, 1 }
   0x7   : > { %p151_p3 = scmp.ne.s32.totalorder %s681_s19, %s677_s18  ;;  %p152_p4 = scmp.eq.s32.totalorder %s474_s23, 1 }
   0x8   : > { %s761_s27 = scalar_select %p133_p1, %s685_s20, %s135_s25  }
   0x9   : > { %p763_p5 = por %p146_p2, %p145_p0  ;;  %p767_p6 = por %p152_p4, %p151_p3 }
   0xa   : > { %p477_p7 = scmp.ge.s32.totalorder %s689_s21, 1  ;;  %p189_p8 = scmp.lt.s32.totalorder %s689_s21, 3 }
   0xc   : > { %p190_p9 = pnand %p477_p7, %p189_p8 }
   0xd   : > { %v221_v0 = vld [vmem:[%s894_s1] sm:$0xff] (!%p190_p9)  ;;  %v222_v1 = vld [vmem:[%s894_s1 + $0x8] sm:$0xff] (!%p190_p9)  ;;  %v223_v2 = vld [vmem:[%s894_s1 + $0x10] sm:$0xff] (!%p190_p9)  ;;  %v691_v3 = vmov (!%p190_p9), 0.0|0.0   ;;  %vm692_vm0 = vmmov (!%p190_p9), 0   ;;  %v693_v6 = vmov (!%p190_p9), 0.0  }
   0xe   : > { %193 = sbr.rel (%p190_p9) target bundleno = 470 (0x1d6), region = 40  ;;  %555 = vmatprep.subr.bf16.mxu0 (!%p190_p9), %v691_v3  ;;  %v556_v4 = vpack.c.bf16 (!%p190_p9), %v222_v1, %v221_v0  ;;  %v224_v5 = vld [vmem:[%s894_s1 + $0x18] sm:$0xff] (!%p190_p9)  ;;  %517 = vmatprep.mubr.msk.f32.mxu0 (!%p190_p9), %vm692_vm0, %v693_v6  ;;  %p216_p10 = scmp.lt.s32.totalorder (!%p190_p9), %s746_s22, 1  ;;  %v307_v7 = vld [vmem:[%s896_s3] sm:$0xff] (!%p190_p9)  ;;  %v308_v8 = vld [vmem:[%s896_s3 + $0x8] sm:$0xff] (!%p190_p9)  ;;  %vm232_vm1 = vcmask (!%p190_p9), 261120  }
   0xf   : > { %561 = vmatprep.subr.bf16.mxu1 (!%p190_p9), %v691_v3  ;;  %v562_v9 = vpack.c.bf16 (!%p190_p9), %v308_v8, %v307_v7  ;;  %v309_v10 = vld [vmem:[%s896_s3 + $0x10] sm:$0xff] (!%p190_p9)  ;;  %v310_v11 = vld [vmem:[%s896_s3 + $0x18] sm:$0xff] (!%p190_p9)  ;;  %552 = vmatprep.mubr.msk.f32.mxu1 (!%p190_p9), %vm692_vm0, %v693_v6  ;;  %v559_v12 = vpack.c.bf16 (!%p190_p9), %v224_v5, %v223_v2  ;;  %v311_v14 = vld [vmem:[%s896_s3 + $0x20] sm:$0xff] (!%p190_p9)  ;;  %s213_s26 = sand.u32 (!%p190_p9), 1, %s681_s19   ;;  %s484_s8 = sshll.u32 (!%p190_p9), %s746_s22, 7 }
  0x10   : > { %557 = vmatpush3.bf16.msra.mxu0 (!%p190_p9), %v556_v4  ;;  %v565_v13 = vpack.c.bf16 (!%p190_p9), %v310_v11, %v309_v10  ;;  %v312_v15 = vld [vmem:[%s896_s3 + $0x28] sm:$0xff] (!%p190_p9)  ;;  %v313_v18 = vld [vmem:[%s896_s3 + $0x30] sm:$0xff] (!%p190_p9)  ;;  %v314_v19 = vld [vmem:[%s896_s3 + $0x38] sm:$0xff] (!%p190_p9)  ;;  %s402_s14 = scalar_lea.sflag (!%p190_p9), [#allocation3], %s213_s26 }
  0x11   : > { %558 = vmatprep.subr.bf16.mxu0 (!%p190_p9), %v691_v3  ;;  %563 = vmatpush3.bf16.msra.mxu1 (!%p190_p9), %v562_v9  ;;  %v568_v17 = vpack.c.bf16 (!%p190_p9), %v312_v15, %v311_v14  ;;  %v571_v20 = vpack.c.bf16 (!%p190_p9), %v314_v19, %v313_v18  ;;  %v315_v21 = vld [vmem:[%s896_s3 + $0x40] sm:$0xff] (!%p190_p9)  ;;  %v316_v22 = vld [vmem:[%s896_s3 + $0x48] sm:$0xff] (!%p190_p9)  ;;  %v317_v24 = vld [vmem:[%s896_s3 + $0x50] sm:$0xff] (!%p190_p9) }
  0x12   : > { %564 = vmatprep.subr.bf16.mxu1 (!%p190_p9), %v691_v3  ;;  %v574_v23 = vpack.c.bf16 (!%p190_p9), %v316_v22, %v315_v21  ;;  %v318_v25 = vld [vmem:[%s896_s3 + $0x58] sm:$0xff] (!%p190_p9)  ;;  %v319_v27 = vld [vmem:[%s896_s3 + $0x60] sm:$0xff] (!%p190_p9)  ;;  %v320_v28 = vld [vmem:[%s896_s3 + $0x68] sm:$0xff] (!%p190_p9) }
  0x13   : > { %v577_v26 = vpack.c.bf16 (!%p190_p9), %v318_v25, %v317_v24  ;;  %v580_v29 = vpack.c.bf16 (!%p190_p9), %v320_v28, %v319_v27  ;;  %v321_v30 = vld [vmem:[%s896_s3 + $0x70] sm:$0xff] (!%p190_p9)  ;;  %v322_v31 = vld [vmem:[%s896_s3 + $0x78] sm:$0xff] (!%p190_p9)  ;;  %v480_v33 = vld [vmem:[%s895_s2] ss:$0 sm:$0xff] (!%p190_p9) }
  0x14   : > { %560 = vmatpush3.bf16.msra.mxu0 (!%p190_p9), %v559_v12  ;;  %v583_v32 = vpack.c.bf16 (!%p190_p9), %v322_v31, %v321_v30  ;;  %v482_v38 = vld [vmem:[%s897_s4] ss:$0 sm:$0xff] (!%p190_p9) }
  0x15   : > { %s217_s30 = scalar_select %p216_p10, %s746_s22, 1  ;;  %566 = vmatpush3.bf16.msra.mxu1 %v565_v13 }
  0x16   : > { %567 = vmatprep.subr.bf16.mxu1 %v691_v3  ;;  %s694_s22 = smov [#allocation2]  }
  0x17   : > { %s479_s6 = sshll.u32 %s217_s30, 3  ;;  %s478_s30 = sshll.u32 %s213_s26, 3 }
  0x18   : > { %s219_s13 = scalar_lea.vmem %s893_s0, %s479_s6  ;;  %s215_s9 = scalar_lea.vmem [#allocation2], %s478_s30 }
  0x19   : > { %v220_v16 = vld [vmem:[%s219_s13] sm:$0xff]  ;;  %569 = vmatpush3.bf16.msra.mxu1 %v568_v17  ;;  %s415_s10 = sshll.u32 %s215_s9, 4  ;;  %s850_s13 = scalar_lea.hbm %s898_s5, %s484_s8  ;;  %s852_s10 = int_to_ptr.vmem [resolvable:$true] %s415_s10 }
  0x1a   : > { %518 = vmatmul.mubr.msk.f32.vlgmr.msra.gmra.mrb[0].mxu0 %vm232_vm1, %v220_v16  ;;  %570 = vmatprep.subr.bf16.mxu1 %v691_v3  ;;  %s627_s15 = scalar_lea.vmem %s852_s10, 128  ;;  %s631_s16 = sshll.u32 %s694_s22, 4  ;;  %s632_s16 = int_to_ptr.vmem [resolvable:$false] %s631_s16 }
  0x1b   : > { %p628_p11 = scmp.ne.s32.totalorder %s852_s10, %s627_s15  ;;  %s633_s17 = scalar_lea.vmem %s632_s16, 256 }
  0x1c   : > { %p634_p0 = scmp.lt.s32.totalorder %s852_s10, %s632_s16  ;;  %p635_p1 = scmp.lt.s32.totalorder %s633_s17, %s627_s15 }
  0x1d   : > { %572 = vmatpush3.bf16.msra.mxu1 %v571_v20  ;;  %p629_p12 = pnand %p628_p11, %p763_p5 }
  0x1e   : > { %573 = vmatprep.subr.bf16.mxu1 %v691_v3  ;;  %p636_p2 = por %p635_p1, %p634_p0 }
  0x1f   : > { %p630_p13 = pneg %p629_p12 }
  0x21   : > { %575 = vmatpush3.bf16.msra.mxu1 %v574_v23  ;;  %p637_p3 = pnand %p636_p2, %p630_p13 }
  0x22   : > { %576 = vmatprep.subr.bf16.mxu1 %v691_v3 }
  0x25   : > { %578 = vmatpush3.bf16.msra.mxu1 %v577_v26 }
  0x26   : > { %579 = vmatprep.subr.bf16.mxu1 %v691_v3 }
  0x29   : > { %581 = vmatpush3.bf16.msra.mxu1 %v580_v29 }
  0x2a   : > { %582 = vmatprep.subr.bf16.mxu1 %v691_v3 }
  0x2d   : > { %584 = vmatpush3.bf16.msra.mxu1 %v583_v32 }
  0xed   : > { %v302_v34 = vpop.f32.mrb[0].mxu0 }
  0xee   : > { %v303_v35 = vadd.f32 %v480_v33, %v302_v34  ;;  %v519_v36 = vpop.f32.mrb[1].mxu0 }
  0xf0   : > { %v306_v37 = vmax.f32 %v303_v35, 0.0 }
  0xf2   : > { %553 = vmatmul.mubr.f32.vlgmr.msra.gmra.mrb[0].mxu1 %v306_v37 }
 0x1c5   : > { %v396_v39 = vpop.f32.mrb[0].mxu1 }
 0x1c6   : > { %v397_v40 = vadd.f32 %v482_v38, %v396_v39  ;;  %v554_v41 = vpop.f32.mrb[1].mxu1 }
 0x1c8   : > { %400 = vst.msk [vmem:[%s215_s9] sm:$0xff] %vm232_vm1, %v397_v40 }
 0x1c9   : > { %640 = shalt.err (!%p637_p3)
}
 0x1ca   : > { %s641_s23 = scalar_lea.hbm %s850_s13, 128  ;;  %s645_s30 = scalar_lea.hbm %s898_s5, 256 }
 0x1cb   : > { %p642_p4 = scmp.ne.s32.totalorder %s850_s13, %s641_s23  ;;  %p646_p9 = scmp.lt.u32.totalorder %s850_s13, %s898_s5 }
 0x1cc   : > { %p647_p10 = scmp.lt.u32.totalorder %s645_s30, %s641_s23  ;;  %p649_p12 = scmp.lt.u32.totalorder %s641_s23, %s850_s13 }
 0x1cd   : > { %p643_p7 = pnand %p642_p4, %p763_p5 }
 0x1ce   : > { %p648_p11 = por %p647_p10, %p646_p9 }
 0x1cf   : > { %p644_p8 = pneg %p643_p7 }
 0x1d0   : > { %p650_p13 = por %p649_p12, %p648_p11 }
 0x1d2   : > { %p651_p0 = pnand %p650_p13, %p644_p8 }
 0x1d4   : > { %654 = shalt.err (!%p651_p0)
}
 0x1d5   : > { %585 = dma.vmem_to_hbm [thread:$0]  (%p763_p5), %s852_s10, 128, %s850_s13, %s402_s14  }
 0x1d6 PF: > { %p591_p1 = scmp.ge.s32.totalorder %s689_s21, 2  ;;  %s427_s8 = sand.u32 1, %s677_s18  }
 0x1d7   : > { %s428_s9 = scalar_lea.sflag [#allocation3], %s427_s8 }
 0x1d8   : > { %p588_p2 = pnand %p591_p1, %p767_p6 }
 0x1da   : > { %672 = dma.done.wait (!%p588_p2), %s428_s9, 128  }
 0x1db   : > { %674 = vsyncadd (!%p588_p2), %s428_s9, 4294967168  ;;  %p15_p3 = scmp.ge.s32.totalorder %s750_s24, 4   ;;  %s901_s18 = smov %s681_s19 }
 0x1dc   : > { %s902_s19 = smov %s685_s20  ;;  %s903_s20 = smov %s761_s27 }
 0x1dd   : > { %s904_s21 = smov %s750_s24  ;;  %17 = sbr.rel (!%p15_p3) target bundleno = 3 (0x3), region = 75 }
 0x1e4   :  { %433 = vsyncpa [#allocation3], 1 }
 0x1e5   :  { %435 = vsyncpa [#allocation3 + $0x1], 1 }

</bundles_post_ra>
